<compile_context>
chip_gen: v6e
topology: v6e:2x2x1
jax: 0.10.0
libtpu: 0.0.40
codegen_flags: <defaults>
</compile_context>

<pallas_src>
import functools
import math

import jax
import jax.numpy as jnp
from jax import lax
from jax.experimental import pallas as pl
from jax.experimental.pallas import tpu as pltpu


def _round_up(x, m):
    return ((x + m - 1) // m) * m


# ----------------------------------------------------------------------------
# Fused (bi)GRU layer kernel.
#   x_ref    : (T*B, Din)            bf16, time-major rows (t*B + b)
#   len_ref  : (B, 1)                int32
#   wih_ref  : (Din, dirs*3*Gp)      bf16   (biases folded separately)
#   bias_ref : (1, dirs*3*Gp)        f32    (b_ih + b_hh[r,z] folded)
#   whh_*    : (Gp, 3*Gp)            bf16
#   bhn_*    : (1, Gp)               f32    (b_hh for the n gate)
#   out_ref  : (T*B, Gp)  f32  if final layer (avg'd + normed)
#              (T*B, dirs*Gp) bf16 otherwise  ([fwd | bwd] feature concat)
#   gi_ref   : (T*B, dirs*3*Gp)      f32 scratch (precomputed projections)
#   h_ref    : (B, Gp)               f32 scratch (recurrent state)
# ----------------------------------------------------------------------------
def _gru_layer_kernel(*refs, T, B, Gp, bidir, final, do_norm):
    if bidir:
        (x_ref, len_ref, wih_ref, bias_ref, whh_f_ref, bhn_f_ref,
         whh_b_ref, bhn_b_ref, out_ref, gi_ref, h_ref) = refs
    else:
        (x_ref, len_ref, wih_ref, bias_ref, whh_f_ref, bhn_f_ref,
         out_ref, gi_ref, h_ref) = refs
        whh_b_ref = bhn_b_ref = None

    G3 = 3 * Gp

    # (1) Hoisted input projection: one big MXU matmul covering every timestep
    #     and both directions; folded biases added once.
    gi = jnp.dot(x_ref[...], wih_ref[...], preferred_element_type=jnp.float32)
    gi_ref[...] = gi + bias_ref[...]

    len_col = len_ref[...]                               # (B, 1) int32, hoisted

    def run_direction(base, whh_ref, bhn_ref, reverse, emit):
        # hoisted broadcast of the n-gate hidden bias (b_hh_n)
        bhn_row = jnp.broadcast_to(bhn_ref[...], (B, Gp))
        h_ref[...] = jnp.zeros((B, Gp), jnp.float32)

        def step(i, carry):
            t = (T - 1 - i) if reverse else i
            row = pl.multiple_of(t * B, B)               # sublane-aligned start
            gi_t = gi_ref[pl.ds(row, B), base:base + G3]     # (B, 3Gp) f32
            h_prev = h_ref[...]                               # (B, Gp)  f32

            gh = jnp.dot(h_prev.astype(jnp.bfloat16), whh_ref[...],
                         preferred_element_type=jnp.float32)  # (B, 3Gp)

            # PyTorch GRU gate order: r, z, n   (128-aligned slices)
            r = jax.nn.sigmoid(gi_t[:, :Gp] + gh[:, :Gp])
            z = jax.nn.sigmoid(gi_t[:, Gp:2 * Gp] + gh[:, Gp:2 * Gp])
            n = jnp.tanh(gi_t[:, 2 * Gp:] + r * (gh[:, 2 * Gp:] + bhn_row))
            h_new = (1.0 - z) * n + z * h_prev

            valid = len_col > t                          # packed-seq mask
            h_new = jnp.where(valid, h_new, h_prev)      # freeze state
            h_ref[...] = h_new
            emit(row, jnp.where(valid, h_new, 0.0))      # zero padded steps
            return carry

        lax.fori_loop(0, T, step, jnp.int32(0))

    # ---- forward direction ------------------------------------------------
    if final:
        def emit_fwd(row, val):
            out_ref[pl.ds(row, B), :] = val
    elif bidir:
        def emit_fwd(row, val):
            out_ref[pl.ds(row, B), :Gp] = val.astype(out_ref.dtype)
    else:
        def emit_fwd(row, val):
            out_ref[pl.ds(row, B), :] = val.astype(out_ref.dtype)

    run_direction(0, whh_f_ref, bhn_f_ref, reverse=False, emit=emit_fwd)

    # ---- backward direction + fused avg / L2-norm epilogue -----------------
    if bidir:
        if final:
            def emit_bwd(row, val):
                comb = (out_ref[pl.ds(row, B), :] + val) * 0.5
                if do_norm:
                    denom = jnp.sqrt(
                        jnp.sum(comb * comb, axis=-1, keepdims=True)) + 1e-8
                    comb = comb * pl.reciprocal(denom, approx=True)
                out_ref[pl.ds(row, B), :] = comb
        else:
            def emit_bwd(row, val):
                out_ref[pl.ds(row, B), Gp:] = val.astype(out_ref.dtype)

        run_direction(G3, whh_b_ref, bhn_b_ref, reverse=True, emit=emit_bwd)
    elif final and do_norm:
        y = out_ref[...]
        denom = jnp.sqrt(jnp.sum(y * y, axis=-1, keepdims=True)) + 1e-8
        out_ref[...] = y * pl.reciprocal(denom, approx=True)


def gru_layer(x, len_col, lw, *, T, B, Gp, bidir, final, do_norm):
    """One fused (bi)GRU layer. x: (T*B, Din) bf16 -> (T*B, W) output."""
    dirs = 2 if bidir else 1
    out_w = Gp if final else dirs * Gp
    out_dtype = jnp.float32 if final else jnp.bfloat16

    kernel = functools.partial(_gru_layer_kernel, T=T, B=B, Gp=Gp,
                               bidir=bidir, final=final, do_norm=do_norm)
    inputs = [x, len_col, lw["wih"], lw["bias"], lw["whh_f"], lw["bhn_f"]]
    if bidir:
        inputs += [lw["whh_b"], lw["bhn_b"]]

    return pl.pallas_call(
        kernel,
        out_shape=jax.ShapeDtypeStruct((T * B, out_w), out_dtype),
        in_specs=[pl.BlockSpec(memory_space=pltpu.MemorySpace.VMEM)]
        * len(inputs),
        out_specs=pl.BlockSpec(memory_space=pltpu.MemorySpace.VMEM),
        scratch_shapes=[pltpu.VMEM((T * B, dirs * 3 * Gp), jnp.float32),
                        pltpu.VMEM((B, Gp), jnp.float32)],
    )(*inputs)


# ----------------------------------------------------------------------------
# Parameter init (canonical nn.GRU / nn.Embedding shapes, pre-transposed for
# x @ W) and padding/fusing into the lane-aligned kernel layout.
# ----------------------------------------------------------------------------
def init_params(key, vocab_size, word_dim, embed_size, num_layers, use_bi_gru):
    dirs = 2 if use_bi_gru else 1
    stdv = 1.0 / math.sqrt(embed_size)
    key, k_embed = jax.random.split(key)
    params = {
        "embed": jax.random.uniform(k_embed, (vocab_size, word_dim),
                                    jnp.float32, -0.1, 0.1),
        "gru": [],
    }
    for layer in range(num_layers):
        in_dim = word_dim if layer == 0 else embed_size * dirs
        layer_params = {}
        for name in (["fwd", "bwd"] if use_bi_gru else ["fwd"]):
            key, k1, k2, k3, k4 = jax.random.split(key, 5)
            w_ih = jax.random.uniform(k1, (in_dim, 3 * embed_size),
                                      jnp.float32, -stdv, stdv)
            w_hh = jax.random.uniform(k2, (embed_size, 3 * embed_size),
                                      jnp.float32, -stdv, stdv)
            b_ih = jax.random.uniform(k3, (3 * embed_size,),
                                      jnp.float32, -stdv, stdv)
            b_hh = jax.random.uniform(k4, (3 * embed_size,),
                                      jnp.float32, -stdv, stdv)
            layer_params[name] = (w_ih, w_hh, b_ih, b_hh)
        params["gru"].append(layer_params)
    return params


def _pad_gate_cols(w, H, Gp):
    """(..., 3H) -> (..., 3Gp): zero-pad each gate block r|z|n to Gp lanes."""
    pad = [(0, 0)] * (w.ndim - 1)
    return jnp.concatenate(
        [jnp.pad(w[..., g * H:(g + 1) * H], pad + [(0, Gp - H)])
         for g in range(3)], axis=-1)


def _pad_in_rows(w, H, Gp, in_dirs):
    """(in_dirs*H, C) -> (in_dirs*Gp, C): place each direction's input block
    at its padded row offset (padded input lanes are always zero)."""
    return jnp.concatenate(
        [jnp.pad(w[d * H:(d + 1) * H], ((0, Gp - H), (0, 0)))
         for d in range(in_dirs)], axis=0)


def prepare_layer_params(layer_params, H, Gp, use_bi_gru, first_layer):
    dirs = 2 if use_bi_gru else 1
    wih_blocks, bias_blocks, whh_list, bhn_list = [], [], [], []
    for name in (["fwd", "bwd"] if use_bi_gru else ["fwd"]):
        w_ih, w_hh, b_ih, b_hh = layer_params[name]
        w_ih_p = _pad_gate_cols(w_ih, H, Gp)
        if not first_layer:
            w_ih_p = _pad_in_rows(w_ih_p, H, Gp, dirs)
        w_hh_p = _pad_gate_cols(w_hh, H, Gp)
        w_hh_p = jnp.pad(w_hh_p, ((0, Gp - H), (0, 0)))
        # fold b_ih (all gates) + b_hh (r,z only) into the precomputed gi bias
        b_rz = jnp.concatenate([b_hh[:2 * H], jnp.zeros((H,), b_hh.dtype)])
        bias_p = _pad_gate_cols((b_ih + b_rz)[None, :], H, Gp)      # (1, 3Gp)
        bhn_p = jnp.pad(b_hh[2 * H:], (0, Gp - H))[None, :]         # (1, Gp)
        wih_blocks.append(w_ih_p)
        bias_blocks.append(bias_p)
        whh_list.append(w_hh_p.astype(jnp.bfloat16))
        bhn_list.append(bhn_p.astype(jnp.float32))
    out = {
        "wih": jnp.concatenate(wih_blocks, axis=1).astype(jnp.bfloat16),
        "bias": jnp.concatenate(bias_blocks, axis=1).astype(jnp.float32),
        "whh_f": whh_list[0], "bhn_f": bhn_list[0],
    }
    if use_bi_gru:
        out["whh_b"] = whh_list[1]
        out["bhn_b"] = bhn_list[1]
    return out


# ----------------------------------------------------------------------------
# EncoderText forward.
# ----------------------------------------------------------------------------
def encoder_text_forward(params, x_ids, lengths, *, embed_size, num_layers,
                         use_bi_gru=False, no_txtnorm=False):
    B0, T = x_ids.shape
    H = embed_size
    Gp = _round_up(H, 128)            # lane-aligned hidden width
    Bp = _round_up(B0, 8)             # sublane-aligned batch

    ids_p = jnp.pad(x_ids, ((0, Bp - B0), (0, 0)))
    len_p = jnp.pad(lengths.astype(jnp.int32), (0, Bp - B0))
    len_col = len_p.reshape(Bp, 1)

    # Embedding gather produced time-major directly (no activation transpose).
    emb = params["embed"][ids_p.T]                       # (T, Bp, D) f32
    x = emb.reshape(T * Bp, -1).astype(jnp.bfloat16)     # (T*Bp, D) bf16

    for layer in range(num_layers):
        final = layer == num_layers - 1
        lw = prepare_layer_params(params["gru"][layer], H, Gp, use_bi_gru,
                                  first_layer=(layer == 0))
        x = gru_layer(x, len_col, lw, T=T, B=Bp, Gp=Gp, bidir=use_bi_gru,
                      final=final, do_norm=(final and not no_txtnorm))

    # (T*Bp, Gp) f32 -> batch-first, drop batch/lane padding.
    out = x.reshape(T, Bp, Gp)
    cap_emb = jnp.transpose(out, (1, 0, 2))[:B0, :, :H]
    return cap_emb, lengths


if __name__ == "__main__":
    vocab_size = 50
    word_dim = 32
    embed_size = 32
    num_layers = 1
    use_bi_gru = True
    no_txtnorm = False

    B, T = 4, 8

    key = jax.random.PRNGKey(0)
    key, k_ids = jax.random.split(key)
    params = init_params(key, vocab_size, word_dim, embed_size,
                         num_layers, use_bi_gru)

    x_ids = jax.random.randint(k_ids, (B, T), 0, vocab_size, dtype=jnp.int32)
    # pack_padded_sequence expects lengths sorted in decreasing order
    lengths = jnp.array([8, 6, 5, 3], dtype=jnp.int32)

    fwd = jax.jit(functools.partial(
        encoder_text_forward, embed_size=embed_size, num_layers=num_layers,
        use_bi_gru=use_bi_gru, no_txtnorm=no_txtnorm))

    cap_emb, cap_len = fwd(params, x_ids, lengths)
    cap_emb = jax.block_until_ready(cap_emb)

    assert cap_emb.shape == (B, T, embed_size)
    assert cap_len.shape == (B,)
    assert bool(jnp.all(jnp.isfinite(cap_emb)))
    print("KERNEL_OK")
</pallas_src>

<mosaic_0001>
module attributes {stable_mosaic.version = 11 : i64} {
  func.func @_gru_layer_kernel(%arg0: memref<64x32xbf16, #tpu.memory_space<vmem>>, %arg1: memref<8x1xi32, #tpu.memory_space<vmem>>, %arg2: memref<32x768xbf16, #tpu.memory_space<vmem>>, %arg3: memref<1x768xf32, #tpu.memory_space<vmem>>, %arg4: memref<128x384xbf16, #tpu.memory_space<vmem>>, %arg5: memref<1x128xf32, #tpu.memory_space<vmem>>, %arg6: memref<128x384xbf16, #tpu.memory_space<vmem>>, %arg7: memref<1x128xf32, #tpu.memory_space<vmem>>, %arg8: memref<64x128xf32, #tpu.memory_space<vmem>>, %arg9: memref<64x768xf32, #tpu.memory_space<vmem>>, %arg10: memref<8x128xf32, #tpu.memory_space<vmem>>) attributes {dimension_semantics = [], scalar_prefetch = 0 : i64, scratch_operands = 2 : i64, tpu.core_type = #tpu.core_type<tc>} {
    %c0 = arith.constant 0 : index
    %c0_0 = arith.constant 0 : index
    %0 = vector.load %arg0[%c0, %c0_0] : memref<64x32xbf16, #tpu.memory_space<vmem>>, vector<64x32xbf16>
    %c0_1 = arith.constant 0 : index
    %c0_2 = arith.constant 0 : index
    %1 = vector.load %arg2[%c0_1, %c0_2] : memref<32x768xbf16, #tpu.memory_space<vmem>>, vector<32x768xbf16>
    %cst = arith.constant dense<0.000000e+00> : vector<64x768xf32>
    %2 = tpu.matmul %0, %1, %cst {dimension_numbers = #tpu.dot_dimension_numbers<[1], [0], [0], [1], [0, 0, 1, 1], [], []>} : vector<64x32xbf16>, vector<32x768xbf16>, vector<64x768xf32> -> vector<64x768xf32>
    %c0_3 = arith.constant 0 : index
    %c0_4 = arith.constant 0 : index
    %3 = vector.load %arg3[%c0_3, %c0_4] : memref<1x768xf32, #tpu.memory_space<vmem>>, vector<1x768xf32>
    %4 = vector.broadcast %3 : vector<1x768xf32> to vector<64x768xf32>
    %5 = arith.addf %2, %4 : vector<64x768xf32>
    %c0_5 = arith.constant 0 : index
    %c0_6 = arith.constant 0 : index
    %6 = vector.load %arg9[%c0_5, %c0_6] : memref<64x768xf32, #tpu.memory_space<vmem>>, vector<64x768xf32>
    tpu.vector_store %arg9[%c0_5, %c0_6], %5 {strides = array<i32>} : memref<64x768xf32, #tpu.memory_space<vmem>>, vector<64x768xf32>,
    %c0_7 = arith.constant 0 : index
    %c0_8 = arith.constant 0 : index
    %7 = vector.load %arg1[%c0_7, %c0_8] : memref<8x1xi32, #tpu.memory_space<vmem>>, vector<8x1xi32>
    %c0_9 = arith.constant 0 : index
    %c0_10 = arith.constant 0 : index
    %8 = vector.load %arg5[%c0_9, %c0_10] : memref<1x128xf32, #tpu.memory_space<vmem>>, vector<1x128xf32>
    %9 = vector.shape_cast %8 : vector<1x128xf32> to vector<1x128xf32>
    %10 = vector.broadcast %9 : vector<1x128xf32> to vector<8x128xf32>
    %cst_11 = arith.constant 0.000000e+00 : f32
    %11 = vector.broadcast %cst_11 : f32 to vector<8x128xf32>
    %c0_12 = arith.constant 0 : index
    %c0_13 = arith.constant 0 : index
    %12 = vector.load %arg10[%c0_12, %c0_13] : memref<8x128xf32, #tpu.memory_space<vmem>>, vector<8x128xf32>
    tpu.vector_store %arg10[%c0_12, %c0_13], %11 {strides = array<i32>} : memref<8x128xf32, #tpu.memory_space<vmem>>, vector<8x128xf32>,
    %c0_i32 = arith.constant 0 : i32
    %c8_i32 = arith.constant 8 : i32
    %13 = arith.addi %c0_i32, %c8_i32 : i32
    %c1_i32 = arith.constant 1 : i32
    scf.for %arg11 = %c0_i32 to %13 step %c1_i32  : i32 {
      %c8_i32_24 = arith.constant 8 : i32
      %20 = arith.muli %arg11, %c8_i32_24 : i32
      %21 = tpu.assume_multiple %20, 8 : i32
      %22 = arith.index_cast %21 : i32 to index
      %c0_25 = arith.constant 0 : index
      %23 = vector.load %arg9[%22, %c0_25] : memref<64x768xf32, #tpu.memory_space<vmem>>, vector<8x384xf32>
      %c0_26 = arith.constant 0 : index
      %c0_27 = arith.constant 0 : index
      %24 = vector.load %arg10[%c0_26, %c0_27] : memref<8x128xf32, #tpu.memory_space<vmem>>, vector<8x128xf32>
      %25 = arith.truncf %24 : vector<8x128xf32> to vector<8x128xbf16>
      %c0_28 = arith.constant 0 : index
      %c0_29 = arith.constant 0 : index
      %26 = vector.load %arg4[%c0_28, %c0_29] : memref<128x384xbf16, #tpu.memory_space<vmem>>, vector<128x384xbf16>
      %cst_30 = arith.constant dense<0.000000e+00> : vector<8x384xf32>
      %27 = tpu.matmul %25, %26, %cst_30 {dimension_numbers = #tpu.dot_dimension_numbers<[1], [0], [0], [1], [0, 0, 1, 1], [], []>} : vector<8x128xbf16>, vector<128x384xbf16>, vector<8x384xf32> -> vector<8x384xf32>
      %28 = vector.extract_strided_slice %23 {offsets = [0, 0], sizes = [8, 128], strides = [1, 1]} : vector<8x384xf32> to vector<8x128xf32>
      %29 = vector.extract_strided_slice %27 {offsets = [0, 0], sizes = [8, 128], strides = [1, 1]} : vector<8x384xf32> to vector<8x128xf32>
      %30 = arith.addf %28, %29 : vector<8x128xf32>
      %31 = arith.negf %30 : vector<8x128xf32>
      %32 = math.exp %31 : vector<8x128xf32>
      %cst_31 = arith.constant 1.000000e+00 : f32
      %33 = vector.broadcast %cst_31 : f32 to vector<8x128xf32>
      %34 = arith.addf %33, %32 : vector<8x128xf32>
      %35 = arith.divf %33, %34 : vector<8x128xf32>
      %36 = vector.extract_strided_slice %23 {offsets = [0, 128], sizes = [8, 128], strides = [1, 1]} : vector<8x384xf32> to vector<8x128xf32>
      %37 = vector.extract_strided_slice %27 {offsets = [0, 128], sizes = [8, 128], strides = [1, 1]} : vector<8x384xf32> to vector<8x128xf32>
      %38 = arith.addf %36, %37 : vector<8x128xf32>
      %39 = arith.negf %38 : vector<8x128xf32>
      %40 = math.exp %39 : vector<8x128xf32>
      %cst_32 = arith.constant 1.000000e+00 : f32
      %41 = vector.broadcast %cst_32 : f32 to vector<8x128xf32>
      %42 = arith.addf %41, %40 : vector<8x128xf32>
      %43 = arith.divf %41, %42 : vector<8x128xf32>
      %44 = vector.extract_strided_slice %23 {offsets = [0, 256], sizes = [8, 128], strides = [1, 1]} : vector<8x384xf32> to vector<8x128xf32>
      %45 = vector.extract_strided_slice %27 {offsets = [0, 256], sizes = [8, 128], strides = [1, 1]} : vector<8x384xf32> to vector<8x128xf32>
      %46 = arith.addf %45, %10 : vector<8x128xf32>
      %47 = arith.mulf %35, %46 : vector<8x128xf32>
      %48 = arith.addf %44, %47 : vector<8x128xf32>
      %49 = math.tanh %48 : vector<8x128xf32>
      %cst_33 = arith.constant 1.000000e+00 : f32
      %50 = vector.broadcast %cst_33 : f32 to vector<8x128xf32>
      %51 = arith.subf %50, %43 : vector<8x128xf32>
      %52 = arith.mulf %51, %49 : vector<8x128xf32>
      %53 = arith.mulf %43, %24 : vector<8x128xf32>
      %54 = arith.addf %52, %53 : vector<8x128xf32>
      %55 = vector.broadcast %arg11 : i32 to vector<8x1xi32>
      %56 = arith.cmpi sgt, %7, %55 : vector<8x1xi32>
      %57 = vector.shape_cast %56 : vector<8x1xi1> to vector<8x1xi1>
      %58 = vector.broadcast %57 : vector<8x1xi1> to vector<8x128xi1>
      %59 = arith.select %58, %54, %24 : vector<8x128xi1>, vector<8x128xf32>
      %c0_34 = arith.constant 0 : index
      %c0_35 = arith.constant 0 : index
      %60 = vector.load %arg10[%c0_34, %c0_35] : memref<8x128xf32, #tpu.memory_space<vmem>>, vector<8x128xf32>
      tpu.vector_store %arg10[%c0_34, %c0_35], %59 {strides = array<i32>} : memref<8x128xf32, #tpu.memory_space<vmem>>, vector<8x128xf32>,
      %cst_36 = arith.constant 0.000000e+00 : f32
      %61 = vector.shape_cast %56 : vector<8x1xi1> to vector<8x1xi1>
      %62 = vector.broadcast %61 : vector<8x1xi1> to vector<8x128xi1>
      %63 = vector.broadcast %cst_36 : f32 to vector<8x128xf32>
      %64 = arith.select %62, %59, %63 : vector<8x128xi1>, vector<8x128xf32>
      %65 = arith.index_cast %21 : i32 to index
      %c0_37 = arith.constant 0 : index
      %66 = vector.load %arg8[%65, %c0_37] : memref<64x128xf32, #tpu.memory_space<vmem>>, vector<8x128xf32>
      tpu.vector_store %arg8[%65, %c0_37], %64 {strides = array<i32>} : memref<64x128xf32, #tpu.memory_space<vmem>>, vector<8x128xf32>,
    }
    %c8_i32_14 = arith.constant 8 : i32
    %c0_15 = arith.constant 0 : index
    %c0_16 = arith.constant 0 : index
    %14 = vector.load %arg7[%c0_15, %c0_16] : memref<1x128xf32, #tpu.memory_space<vmem>>, vector<1x128xf32>
    %15 = vector.shape_cast %14 : vector<1x128xf32> to vector<1x128xf32>
    %16 = vector.broadcast %15 : vector<1x128xf32> to vector<8x128xf32>
    %cst_17 = arith.constant 0.000000e+00 : f32
    %17 = vector.broadcast %cst_17 : f32 to vector<8x128xf32>
    %c0_18 = arith.constant 0 : index
    %c0_19 = arith.constant 0 : index
    %18 = vector.load %arg10[%c0_18, %c0_19] : memref<8x128xf32, #tpu.memory_space<vmem>>, vector<8x128xf32>
    tpu.vector_store %arg10[%c0_18, %c0_19], %17 {strides = array<i32>} : memref<8x128xf32, #tpu.memory_space<vmem>>, vector<8x128xf32>,
    %c0_i32_20 = arith.constant 0 : i32
    %c8_i32_21 = arith.constant 8 : i32
    %19 = arith.addi %c0_i32_20, %c8_i32_21 : i32
    %c1_i32_22 = arith.constant 1 : i32
    scf.for %arg11 = %c0_i32_20 to %19 step %c1_i32_22  : i32 {
      %c7_i32 = arith.constant 7 : i32
      %20 = arith.subi %c7_i32, %arg11 : i32
      %c8_i32_24 = arith.constant 8 : i32
      %21 = arith.muli %20, %c8_i32_24 : i32
      %22 = tpu.assume_multiple %21, 8 : i32
      %23 = arith.index_cast %22 : i32 to index
      %c384 = arith.constant 384 : index
      %24 = vector.load %arg9[%23, %c384] : memref<64x768xf32, #tpu.memory_space<vmem>>, vector<8x384xf32>
      %c0_25 = arith.constant 0 : index
      %c0_26 = arith.constant 0 : index
      %25 = vector.load %arg10[%c0_25, %c0_26] : memref<8x128xf32, #tpu.memory_space<vmem>>, vector<8x128xf32>
      %26 = arith.truncf %25 : vector<8x128xf32> to vector<8x128xbf16>
      %c0_27 = arith.constant 0 : index
      %c0_28 = arith.constant 0 : index
      %27 = vector.load %arg6[%c0_27, %c0_28] : memref<128x384xbf16, #tpu.memory_space<vmem>>, vector<128x384xbf16>
      %cst_29 = arith.constant dense<0.000000e+00> : vector<8x384xf32>
      %28 = tpu.matmul %26, %27, %cst_29 {dimension_numbers = #tpu.dot_dimension_numbers<[1], [0], [0], [1], [0, 0, 1, 1], [], []>} : vector<8x128xbf16>, vector<128x384xbf16>, vector<8x384xf32> -> vector<8x384xf32>
      %29 = vector.extract_strided_slice %24 {offsets = [0, 0], sizes = [8, 128], strides = [1, 1]} : vector<8x384xf32> to vector<8x128xf32>
      %30 = vector.extract_strided_slice %28 {offsets = [0, 0], sizes = [8, 128], strides = [1, 1]} : vector<8x384xf32> to vector<8x128xf32>
      %31 = arith.addf %29, %30 : vector<8x128xf32>
      %32 = arith.negf %31 : vector<8x128xf32>
      %33 = math.exp %32 : vector<8x128xf32>
      %cst_30 = arith.constant 1.000000e+00 : f32
      %34 = vector.broadcast %cst_30 : f32 to vector<8x128xf32>
      %35 = arith.addf %34, %33 : vector<8x128xf32>
      %36 = arith.divf %34, %35 : vector<8x128xf32>
      %37 = vector.extract_strided_slice %24 {offsets = [0, 128], sizes = [8, 128], strides = [1, 1]} : vector<8x384xf32> to vector<8x128xf32>
      %38 = vector.extract_strided_slice %28 {offsets = [0, 128], sizes = [8, 128], strides = [1, 1]} : vector<8x384xf32> to vector<8x128xf32>
      %39 = arith.addf %37, %38 : vector<8x128xf32>
      %40 = arith.negf %39 : vector<8x128xf32>
      %41 = math.exp %40 : vector<8x128xf32>
      %cst_31 = arith.constant 1.000000e+00 : f32
      %42 = vector.broadcast %cst_31 : f32 to vector<8x128xf32>
      %43 = arith.addf %42, %41 : vector<8x128xf32>
      %44 = arith.divf %42, %43 : vector<8x128xf32>
      %45 = vector.extract_strided_slice %24 {offsets = [0, 256], sizes = [8, 128], strides = [1, 1]} : vector<8x384xf32> to vector<8x128xf32>
      %46 = vector.extract_strided_slice %28 {offsets = [0, 256], sizes = [8, 128], strides = [1, 1]} : vector<8x384xf32> to vector<8x128xf32>
      %47 = arith.addf %46, %16 : vector<8x128xf32>
      %48 = arith.mulf %36, %47 : vector<8x128xf32>
      %49 = arith.addf %45, %48 : vector<8x128xf32>
      %50 = math.tanh %49 : vector<8x128xf32>
      %cst_32 = arith.constant 1.000000e+00 : f32
      %51 = vector.broadcast %cst_32 : f32 to vector<8x128xf32>
      %52 = arith.subf %51, %44 : vector<8x128xf32>
      %53 = arith.mulf %52, %50 : vector<8x128xf32>
      %54 = arith.mulf %44, %25 : vector<8x128xf32>
      %55 = arith.addf %53, %54 : vector<8x128xf32>
      %56 = vector.broadcast %20 : i32 to vector<8x1xi32>
      %57 = arith.cmpi sgt, %7, %56 : vector<8x1xi32>
      %58 = vector.shape_cast %57 : vector<8x1xi1> to vector<8x1xi1>
      %59 = vector.broadcast %58 : vector<8x1xi1> to vector<8x128xi1>
      %60 = arith.select %59, %55, %25 : vector<8x128xi1>, vector<8x128xf32>
      %c0_33 = arith.constant 0 : index
      %c0_34 = arith.constant 0 : index
      %61 = vector.load %arg10[%c0_33, %c0_34] : memref<8x128xf32, #tpu.memory_space<vmem>>, vector<8x128xf32>
      tpu.vector_store %arg10[%c0_33, %c0_34], %60 {strides = array<i32>} : memref<8x128xf32, #tpu.memory_space<vmem>>, vector<8x128xf32>,
      %cst_35 = arith.constant 0.000000e+00 : f32
      %62 = vector.shape_cast %57 : vector<8x1xi1> to vector<8x1xi1>
      %63 = vector.broadcast %62 : vector<8x1xi1> to vector<8x128xi1>
      %64 = vector.broadcast %cst_35 : f32 to vector<8x128xf32>
      %65 = arith.select %63, %60, %64 : vector<8x128xi1>, vector<8x128xf32>
      %66 = arith.index_cast %22 : i32 to index
      %c0_36 = arith.constant 0 : index
      %67 = vector.load %arg8[%66, %c0_36] : memref<64x128xf32, #tpu.memory_space<vmem>>, vector<8x128xf32>
      %68 = arith.addf %67, %65 : vector<8x128xf32>
      %cst_37 = arith.constant 5.000000e-01 : f32
      %69 = vector.broadcast %cst_37 : f32 to vector<8x128xf32>
      %70 = arith.mulf %68, %69 : vector<8x128xf32>
      %71 = arith.mulf %70, %70 : vector<8x128xf32>
      %cst_38 = arith.constant dense<0.000000e+00> : vector<8xf32>
      %72 = vector.multi_reduction <add>, %71, %cst_38 [1] : vector<8x128xf32> to vector<8xf32>
      %73 = vector.shape_cast %72 : vector<8xf32> to vector<8x1xf32>
      %74 = math.sqrt %73 : vector<8x1xf32>
      %cst_39 = arith.constant 9.99999993E-9 : f32
      %75 = vector.broadcast %cst_39 : f32 to vector<8x1xf32>
      %76 = arith.addf %74, %75 : vector<8x1xf32>
      %77 = tpu.reciprocal %76 {approx = true} : vector<8x1xf32> -> vector<8x1xf32>
      %78 = vector.broadcast %77 : vector<8x1xf32> to vector<8x128xf32>
      %79 = arith.mulf %70, %78 : vector<8x128xf32>
      %80 = arith.index_cast %22 : i32 to index
      %c0_40 = arith.constant 0 : index
      %81 = vector.load %arg8[%80, %c0_40] : memref<64x128xf32, #tpu.memory_space<vmem>>, vector<8x128xf32>
      tpu.vector_store %arg8[%80, %c0_40], %79 {strides = array<i32>} : memref<64x128xf32, #tpu.memory_space<vmem>>, vector<8x128xf32>,
    }
    %c8_i32_23 = arith.constant 8 : i32
    return
  }
}

</mosaic_0001>

<bundles_post_ra>
// kernel: encoder_text_forward.1
= control target key start
LH: loop header
LB: loop body
LE: loop exit
PB: predicated region body
PF: predicated region fallthrough
CT: control target
= control target key end

     0   :  { %v1384_v1 = vmov 0   ;;  %vm162_vm0 = vcmask 261120   ;;  %v1385_v19 = vmov 0.0   ;;  %v52_v20 = vlaneseq  ;;  %s1760_s2 = inlined_call_operand.vmem [shape: bf16[32,768], index: 2, kind: input, shape index: {}]   ;;  %s1761_s4 = inlined_call_operand.vmem [shape: bf16[128,384], index: 4, kind: input, shape index: {}]   ;;  %s1762_s6 = inlined_call_operand.vmem [shape: bf16[128,384], index: 6, kind: input, shape index: {}]   ;;  %s1763_s7 = inlined_call_operand.vmem [shape: f32[1,128], index: 7, kind: input, shape index: {}]   ;;  %s1764_s8 = inlined_call_operand.vmem [shape: f32[64,128], index: 8, kind: output, shape index: {}]   ;;  %s1765_s0 = inlined_call_operand.vmem [shape: bf16[64,32], index: 0, kind: input, shape index: {}]   ;;  %s1766_s1 = inlined_call_operand.vmem [shape: s32[8,1], index: 1, kind: input, shape index: {}]   ;;  %s1767_s5 = inlined_call_operand.vmem [shape: f32[1,128], index: 5, kind: input, shape index: {}]   ;;  %s1768_s3 = inlined_call_operand.vmem [shape: f32[1,768], index: 3, kind: input, shape index: {}]  }
   0x1   :  { %v1256_v0 = vld [vmem:[%s1760_s2 + $0x34] ss:$24 sps:$4 sm:$0xff]   ;;  %207 = vmatprep.mubr.bf16.mxu0 %v1384_v1  ;;  %227 = vmatprep.mubr.bf16.mxu1 %v1384_v1  ;;  %v1258_v2 = vld [vmem:[%s1760_s2 + $0x30] ss:$24 sps:$4 sm:$0xff]   ;;  %v1259_v3 = vld [vmem:[%s1760_s2 + $0x4] ss:$24 sps:$4 sm:$0xff]  }
   0x2   :  { %187 = vmatprep.subr.bf16.mxu0 %v1256_v0  ;;  %1228 = vmatprep.subr.bf16.mxu1 %v1256_v0  ;;  %v1261_v4 = vld [vmem:[%s1760_s2] ss:$24 sps:$4 sm:$0xff]   ;;  %v1263_v6 = vld [vmem:[%s1765_s0 + $0x10] sm:$0xff]   ;;  %v1269_v10 = vld [vmem:[%s1760_s2 + $0x44] ss:$24 sps:$4 sm:$0xff]   ;;  %450 = vst [vmem:[#allocation3] sm:$0xff] %v1385_v19 }
   0x3   :  { %188 = vmatpush1.bf16.msra.mxu0 %v1258_v2  ;;  %1230 = vmatpush1.bf16.msra.mxu1 %v1258_v2  ;;  %v1262_v5 = vld [vmem:[%s1765_s0] sm:$0xff]   ;;  %v1264_v7 = vld [vmem:[%s1760_s2 + $0x38] ss:$24 sps:$4 sm:$0xff]   ;;  %v1266_v8 = vld [vmem:[%s1760_s2 + $0x3c] ss:$24 sps:$4 sm:$0xff]   ;;  %v53_v21 = vshrl.u32 %v52_v20, 7 }
   0x4   :  { %189 = vmatprep.subr.bf16.mxu0 %v1259_v3  ;;  %1229 = vmatprep.subr.bf16.mxu1 %v1259_v3  ;;  %v1267_v9 = vld [vmem:[%s1760_s2 + $0x40] ss:$24 sps:$4 sm:$0xff]   ;;  %v1274_v12 = vld [vmem:[%s1760_s2 + $0xc] ss:$24 sps:$4 sm:$0xff]   ;;  %v1275_v13 = vld [vmem:[%s1760_s2 + $0x10] ss:$24 sps:$4 sm:$0xff]  }
   0x5   :  { %v1272_v11 = vld [vmem:[%s1760_s2 + $0x8] ss:$24 sps:$4 sm:$0xff]   ;;  %v1277_v14 = vld [vmem:[%s1760_s2 + $0x14] ss:$24 sps:$4 sm:$0xff]   ;;  %v1271_v16 = vld [vmem:[%s1765_s0 + $0x18] sm:$0xff]   ;;  %v54_v22 = vsub.s32 0, %v53_v21 }
   0x6   :  { %v1270_v15 = vld [vmem:[%s1765_s0 + $0x8] sm:$0xff]   ;;  %v1500_v17 = vld [vmem:[%s1766_s1] sm:$0xff]  ;;  %v58_v24 = vsub.s32 1, %v53_v21  ;;  %v62_v47 = vsub.s32 2, %v53_v21  ;;  %v70_v48 = vsub.s32 4, %v53_v21  ;;  %v66_v53 = vsub.s32 3, %v53_v21 }
   0x7   :  { %190 = vmatpush1.bf16.msra.mxu0 %v1261_v4  ;;  %1231 = vmatpush1.bf16.msra.mxu1 %v1261_v4  ;;  %v1505_v18 = vld [vmem:[%s1767_s5] ss:$0 sm:$0xff]  ;;  %v74_v54 = vsub.s32 5, %v53_v21  ;;  %s1551_s1 = smov 0  }
   0x8   :  { %260 = vmatprep.subr.bf16.mxu1 %v1266_v8  ;;  %333 = vmatprep.subr.bf16.mxu0 %v1269_v10  ;;  %v50_v23 = vld [vmem:[%s1768_s3] sm:$0x3f] }
   0x9   :  { %v55_v25 = vrot.slane %v50_v23, %v54_v22  ;;  %v59_v26 = vrot.slane %v50_v23, %v58_v24  ;;  %v1511_v59 = vrot.slane %v50_v23, %v62_v47  ;;  %v1513_v60 = vrot.slane %v50_v23, %v70_v48 }
   0xa   :  { %1098 = vmatmul.mubr.msk.bf16.vlgmr.msra.gmra.mxu0 %vm162_vm0, %v1262_v5  ;;  %1100 = vmatmul.mubr.msk.bf16.vlgmr.msra.gmra.mxu1 %vm162_vm0, %v1263_v6  ;;  %v1517_v2 = vrot.slane %v50_v23, %v74_v54 }
   0xb   :  { %261 = vmatpush1.bf16.msra.mxu1 %v1264_v7  ;;  %334 = vmatpush1.bf16.msra.mxu0 %v1267_v9 }
   0xc   :  { %217 = vmatprep.mubr.bf16.mxu0 %v1384_v1  ;;  %237 = vmatprep.mubr.bf16.mxu1 %v1384_v1 }
   0xd   :  { %262 = vmatprep.subr.bf16.mxu1 %v1274_v12  ;;  %335 = vmatprep.subr.bf16.mxu0 %v1277_v14 }
   0xf   :  { %263 = vmatpush1.bf16.msra.mxu1 %v1272_v11  ;;  %336 = vmatpush1.bf16.msra.mxu0 %v1275_v13 }
  0x12   :  { %1099 = vmatmul.mubr.msk.bf16.gmra.mxu0 %vm162_vm0, %v1270_v15  ;;  %1101 = vmatmul.mubr.msk.bf16.gmra.mxu1 %vm162_vm0, %v1271_v16 }
  0x13   :  { %280 = vmatprep.mubr.bf16.mxu1 %v1384_v1  ;;  %353 = vmatprep.mubr.bf16.mxu0 %v1384_v1 }
  0x1a   :  { %1102 = vmatmul.mubr.msk.bf16.vlgmr.msra.gmra.mxu1 %vm162_vm0, %v1262_v5  ;;  %1106 = vmatmul.mubr.msk.bf16.vlgmr.msra.gmra.mxu0 %vm162_vm0, %v1262_v5 }
  0x1b   :  { %290 = vmatprep.mubr.bf16.mxu1 %v1384_v1  ;;  %363 = vmatprep.mubr.bf16.mxu0 %v1384_v1 }
  0x22   :  { %1103 = vmatmul.mubr.msk.bf16.gmra.mxu1 %vm162_vm0, %v1270_v15  ;;  %1107 = vmatmul.mubr.msk.bf16.gmra.mxu0 %vm162_vm0, %v1270_v15 }
  0x23   :  { %300 = vmatprep.mubr.bf16.mxu1 %v1384_v1  ;;  %373 = vmatprep.mubr.bf16.mxu0 %v1384_v1 }
  0x2a   :  { %1104 = vmatmul.mubr.msk.bf16.gmra.mxu1 %vm162_vm0, %v1263_v6  ;;  %1108 = vmatmul.mubr.msk.bf16.gmra.mxu0 %vm162_vm0, %v1263_v6 }
  0x2b   :  { %310 = vmatprep.mubr.bf16.mxu1 %v1384_v1  ;;  %383 = vmatprep.mubr.bf16.mxu0 %v1384_v1  ;;  %v1515_v1 = vrot.slane %v50_v23, %v66_v53 }
  0x32   :  { %1105 = vmatmul.mubr.msk.bf16.gmra.mxu1 %vm162_vm0, %v1271_v16  ;;  %1109 = vmatmul.mubr.msk.bf16.gmra.mxu0 %vm162_vm0, %v1271_v16 }
  0xca   :  { %v209_v27 = vpop.f32.mrf.mxu0  ;;  %v229_v28 = vpop.f32.mrf.mxu1 }
  0xcb   :  { %v210_v29 = vadd.f32 %v209_v27, %v55_v25  ;;  %v230_v30 = vadd.f32 %v229_v28, %v55_v25 }
  0xcc   :  { %v211_v31 = vpop.f32.mrf.mxu0  ;;  %v231_v32 = vpop.f32.mrf.mxu1 }
  0xcd   :  { %394 = vst [vmem:[#allocation2] sm:$0xff] %v210_v29  ;;  %418 = vst [vmem:[#allocation2 + $0xc0] sm:$0xff] %v230_v30  ;;  %v212_v33 = vadd.f32 %v211_v31, %v59_v26  ;;  %v232_v34 = vadd.f32 %v231_v32, %v59_v26 }
  0xce   :  { %v213_v35 = vpop.f32.mrf.mxu0  ;;  %v233_v36 = vpop.f32.mrf.mxu1 }
  0xcf   :  { %395 = vst [vmem:[#allocation2 + $0x8] sm:$0xff] %v212_v33  ;;  %419 = vst [vmem:[#allocation2 + $0xc8] sm:$0xff] %v232_v34  ;;  %v214_v37 = vadd.f32 %v213_v35, %v55_v25  ;;  %v234_v38 = vadd.f32 %v233_v36, %v55_v25 }
  0xd0   :  { %v215_v39 = vpop.f32.mrf.mxu0  ;;  %v235_v40 = vpop.f32.mrf.mxu1 }
  0xd1   :  { %400 = vst [vmem:[#allocation2 + $0x30] sm:$0xff] %v214_v37  ;;  %424 = vst [vmem:[#allocation2 + $0xf0] sm:$0xff] %v234_v38  ;;  %v216_v41 = vadd.f32 %v215_v39, %v59_v26  ;;  %v236_v42 = vadd.f32 %v235_v40, %v59_v26 }
  0xd2   :  { %v219_v43 = vpop.f32.mrf.mxu0  ;;  %v239_v44 = vpop.f32.mrf.mxu1 }
  0xd3   :  { %401 = vst [vmem:[#allocation2 + $0x38] sm:$0xff] %v216_v41  ;;  %425 = vst [vmem:[#allocation2 + $0xf8] sm:$0xff] %v236_v42  ;;  %v220_v45 = vadd.f32 %v219_v43, %v55_v25  ;;  %v240_v46 = vadd.f32 %v239_v44, %v55_v25 }
  0xd4   :  { %v221_v49 = vpop.f32.mrf.mxu0  ;;  %v241_v50 = vpop.f32.mrf.mxu1 }
  0xd5   :  { %406 = vst [vmem:[#allocation2 + $0x60] sm:$0xff] %v220_v45  ;;  %430 = vst [vmem:[#allocation2 + $0x120] sm:$0xff] %v240_v46  ;;  %v222_v51 = vadd.f32 %v221_v49, %v59_v26  ;;  %v242_v52 = vadd.f32 %v241_v50, %v59_v26 }
  0xd6   :  { %v223_v55 = vpop.f32.mrf.mxu0  ;;  %v243_v56 = vpop.f32.mrf.mxu1 }
  0xd7   :  { %407 = vst [vmem:[#allocation2 + $0x68] sm:$0xff] %v222_v51  ;;  %431 = vst [vmem:[#allocation2 + $0x128] sm:$0xff] %v242_v52  ;;  %v224_v57 = vadd.f32 %v223_v55, %v55_v25  ;;  %v244_v58 = vadd.f32 %v243_v56, %v55_v25 }
  0xd8   :  { %v225_v61 = vpop.f32.mrf.mxu0  ;;  %v245_v62 = vpop.f32.mrf.mxu1 }
  0xd9   :  { %412 = vst [vmem:[#allocation2 + $0x90] sm:$0xff] %v224_v57  ;;  %436 = vst [vmem:[#allocation2 + $0x150] sm:$0xff] %v244_v58  ;;  %v226_v63 = vadd.f32 %v225_v61, %v59_v26  ;;  %v246_v0 = vadd.f32 %v245_v62, %v59_v26 }
  0xda   :  { %v282_v3 = vpop.f32.mrf.mxu1  ;;  %v355_v4 = vpop.f32.mrf.mxu0 }
  0xdb   :  { %413 = vst [vmem:[#allocation2 + $0x98] sm:$0xff] %v226_v63  ;;  %437 = vst [vmem:[#allocation2 + $0x158] sm:$0xff] %v246_v0  ;;  %v283_v5 = vadd.f32 %v282_v3, %v1511_v59  ;;  %v356_v6 = vadd.f32 %v355_v4, %v1513_v60 }
  0xdc   :  { %v284_v7 = vpop.f32.mrf.mxu1  ;;  %v357_v8 = vpop.f32.mrf.mxu0 }
  0xdd   :  { %396 = vst [vmem:[#allocation2 + $0x10] sm:$0xff] %v283_v5  ;;  %398 = vst [vmem:[#allocation2 + $0x20] sm:$0xff] %v356_v6  ;;  %v285_v9 = vadd.f32 %v284_v7, %v1515_v1  ;;  %v358_v10 = vadd.f32 %v357_v8, %v1517_v2 }
  0xde   :  { %v286_v11 = vpop.f32.mrf.mxu1  ;;  %v359_v12 = vpop.f32.mrf.mxu0 }
  0xdf   :  { %397 = vst [vmem:[#allocation2 + $0x18] sm:$0xff] %v285_v9  ;;  %399 = vst [vmem:[#allocation2 + $0x28] sm:$0xff] %v358_v10  ;;  %v287_v13 = vadd.f32 %v286_v11, %v1511_v59  ;;  %v360_v14 = vadd.f32 %v359_v12, %v1513_v60 }
  0xe0   :  { %v288_v15 = vpop.f32.mrf.mxu1  ;;  %v361_v16 = vpop.f32.mrf.mxu0 }
  0xe1   :  { %402 = vst [vmem:[#allocation2 + $0x40] sm:$0xff] %v287_v13  ;;  %404 = vst [vmem:[#allocation2 + $0x50] sm:$0xff] %v360_v14  ;;  %v289_v20 = vadd.f32 %v288_v15, %v1515_v1  ;;  %v362_v21 = vadd.f32 %v361_v16, %v1517_v2 }
  0xe2   :  { %v292_v22 = vpop.f32.mrf.mxu1  ;;  %v365_v23 = vpop.f32.mrf.mxu0 }
  0xe3   :  { %403 = vst [vmem:[#allocation2 + $0x48] sm:$0xff] %v289_v20  ;;  %405 = vst [vmem:[#allocation2 + $0x58] sm:$0xff] %v362_v21  ;;  %v293_v24 = vadd.f32 %v292_v22, %v1511_v59  ;;  %v366_v25 = vadd.f32 %v365_v23, %v1513_v60 }
  0xe4   :  { %v294_v26 = vpop.f32.mrf.mxu1  ;;  %v367_v27 = vpop.f32.mrf.mxu0 }
  0xe5   :  { %408 = vst [vmem:[#allocation2 + $0x70] sm:$0xff] %v293_v24  ;;  %410 = vst [vmem:[#allocation2 + $0x80] sm:$0xff] %v366_v25  ;;  %v295_v28 = vadd.f32 %v294_v26, %v1515_v1  ;;  %v368_v29 = vadd.f32 %v367_v27, %v1517_v2 }
  0xe6   :  { %v296_v30 = vpop.f32.mrf.mxu1  ;;  %v369_v31 = vpop.f32.mrf.mxu0 }
  0xe7   :  { %409 = vst [vmem:[#allocation2 + $0x78] sm:$0xff] %v295_v28  ;;  %411 = vst [vmem:[#allocation2 + $0x88] sm:$0xff] %v368_v29  ;;  %v297_v32 = vadd.f32 %v296_v30, %v1511_v59  ;;  %v370_v33 = vadd.f32 %v369_v31, %v1513_v60 }
  0xe8   :  { %v298_v34 = vpop.f32.mrf.mxu1  ;;  %v371_v35 = vpop.f32.mrf.mxu0 }
  0xe9   :  { %414 = vst [vmem:[#allocation2 + $0xa0] sm:$0xff] %v297_v32  ;;  %416 = vst [vmem:[#allocation2 + $0xb0] sm:$0xff] %v370_v33  ;;  %v299_v36 = vadd.f32 %v298_v34, %v1515_v1  ;;  %v372_v37 = vadd.f32 %v371_v35, %v1517_v2 }
  0xea   :  { %v302_v38 = vpop.f32.mrf.mxu1  ;;  %v375_v39 = vpop.f32.mrf.mxu0 }
  0xeb   :  { %415 = vst [vmem:[#allocation2 + $0xa8] sm:$0xff] %v299_v36  ;;  %417 = vst [vmem:[#allocation2 + $0xb8] sm:$0xff] %v372_v37  ;;  %v303_v40 = vadd.f32 %v302_v38, %v1511_v59  ;;  %v376_v41 = vadd.f32 %v375_v39, %v1513_v60 }
  0xec   :  { %v304_v42 = vpop.f32.mrf.mxu1  ;;  %v377_v43 = vpop.f32.mrf.mxu0 }
  0xed   :  { %420 = vst [vmem:[#allocation2 + $0xd0] sm:$0xff] %v303_v40  ;;  %422 = vst [vmem:[#allocation2 + $0xe0] sm:$0xff] %v376_v41  ;;  %v305_v44 = vadd.f32 %v304_v42, %v1515_v1  ;;  %v378_v45 = vadd.f32 %v377_v43, %v1517_v2 }
  0xee   :  { %v306_v46 = vpop.f32.mrf.mxu1  ;;  %v379_v47 = vpop.f32.mrf.mxu0 }
  0xef   :  { %421 = vst [vmem:[#allocation2 + $0xd8] sm:$0xff] %v305_v44  ;;  %423 = vst [vmem:[#allocation2 + $0xe8] sm:$0xff] %v378_v45  ;;  %v307_v48 = vadd.f32 %v306_v46, %v1511_v59  ;;  %v380_v49 = vadd.f32 %v379_v47, %v1513_v60 }
  0xf0   :  { %v308_v50 = vpop.f32.mrf.mxu1  ;;  %v381_v51 = vpop.f32.mrf.mxu0 }
  0xf1   :  { %426 = vst [vmem:[#allocation2 + $0x100] sm:$0xff] %v307_v48  ;;  %428 = vst [vmem:[#allocation2 + $0x110] sm:$0xff] %v380_v49  ;;  %v309_v52 = vadd.f32 %v308_v50, %v1515_v1  ;;  %v382_v53 = vadd.f32 %v381_v51, %v1517_v2 }
  0xf2   :  { %v312_v54 = vpop.f32.mrf.mxu1  ;;  %v385_v55 = vpop.f32.mrf.mxu0 }
  0xf3   :  { %427 = vst [vmem:[#allocation2 + $0x108] sm:$0xff] %v309_v52  ;;  %429 = vst [vmem:[#allocation2 + $0x118] sm:$0xff] %v382_v53  ;;  %v313_v56 = vadd.f32 %v312_v54, %v1511_v59  ;;  %v386_v57 = vadd.f32 %v385_v55, %v1513_v60 }
  0xf4   :  { %v314_v58 = vpop.f32.mrf.mxu1  ;;  %v387_v61 = vpop.f32.mrf.mxu0 }
  0xf5   :  { %432 = vst [vmem:[#allocation2 + $0x130] sm:$0xff] %v313_v56  ;;  %434 = vst [vmem:[#allocation2 + $0x140] sm:$0xff] %v386_v57  ;;  %v315_v62 = vadd.f32 %v314_v58, %v1515_v1  ;;  %v388_v63 = vadd.f32 %v387_v61, %v1517_v2 }
  0xf6   :  { %v316_v0 = vpop.f32.mrf.mxu1  ;;  %v389_v3 = vpop.f32.mrf.mxu0 }
  0xf7   :  { %433 = vst [vmem:[#allocation2 + $0x138] sm:$0xff] %v315_v62  ;;  %435 = vst [vmem:[#allocation2 + $0x148] sm:$0xff] %v388_v63  ;;  %v317_v4 = vadd.f32 %v316_v0, %v1511_v59  ;;  %v390_v5 = vadd.f32 %v389_v3, %v1513_v60 }
  0xf8   :  { %v318_v6 = vpop.f32.mrf.mxu1  ;;  %v391_v7 = vpop.f32.mrf.mxu0 }
  0xf9   :  { %438 = vst [vmem:[#allocation2 + $0x160] sm:$0xff] %v317_v4  ;;  %440 = vst [vmem:[#allocation2 + $0x170] sm:$0xff] %v390_v5  ;;  %v319_v8 = vadd.f32 %v318_v6, %v1515_v1  ;;  %v392_v9 = vadd.f32 %v391_v7, %v1517_v2 }
  0xfb   :  { %439 = vst [vmem:[#allocation2 + $0x168] sm:$0xff] %v319_v8  ;;  %441 = vst [vmem:[#allocation2 + $0x178] sm:$0xff] %v392_v9 }
  0xfc LB: > { %v1279_v59 = vld [vmem:[%s1761_s4 + $0xac] ss:$12 sps:$4 sm:$0xff]   ;;  %v1281_v60 = vld [vmem:[%s1761_s4 + $0xa8] ss:$12 sps:$4 sm:$0xff]   ;;  %v1386_v1 = vmov 0.0   ;;  %v1387_v2 = vmov 0   ;;  %v731_v11 = vstv %s1378_s1  ;;  %s1378_s1 = sphi %s1551_s1, %s456_s1  }
  0xfd   : > { %1188 = vmatprep.subr.bf16.mxu1 %v1386_v1  ;;  %660 = vmatprep.mubr.bf16.mxu0 %v1387_v2  ;;  %v1282_v10 = vld [vmem:[%s1761_s4 + $0x94] ss:$12 sps:$4 sm:$0xff]   ;;  %vm1388_vm1 = vmmov 0   ;;  %v1284_v12 = vld [vmem:[%s1761_s4 + $0x90] ss:$12 sps:$4 sm:$0xff]   ;;  %vm732_vm2 = vcmp.gt.s32.totalorder %v1500_v17, %v731_v11  ;;  %s1111_s15 = sshll.u32 %s1378_s1, 3 }
  0xfe   : > { %628 = vmatprep.subr.bf16.mxu0 %v1279_v59  ;;  %1204 = vmatprep.mubr.msk.bf16.mxu1 %vm1388_vm1, %v1386_v1  ;;  %v1285_v13 = vld [vmem:[%s1761_s4 + $0x7c] ss:$12 sps:$4 sm:$0xff]   ;;  %v733_v14 = vsel %vm732_vm2, 1, %v1387_v2  ;;  %v1287_v15 = vld [vmem:[%s1761_s4 + $0x78] ss:$12 sps:$4 sm:$0xff]   ;;  %s458_s16 = sshra.s32 %s1111_s15, 3  ;;  %s741_s19 = scalar_lea.vmem %s1764_s8, %s1111_s15 }
  0xff   : > { %629 = vmatpush1.bf16.msra.mxu0 %v1281_v60  ;;  %1278 = vset.pattern.permute.xlu0 %v1387_v2  ;;  %v1288_v16 = vld [vmem:[%s1761_s4 + $0x64] ss:$12 sps:$4 sm:$0xff]   ;;  %v1290_v21 = vld [vmem:[%s1761_s4 + $0x60] ss:$12 sps:$4 sm:$0xff]   ;;  %v1293_v24 = vld [vmem:[%s1761_s4 + $0x48] ss:$12 sps:$4 sm:$0xff]  }
 0x100   : > { %630 = vmatprep.subr.bf16.mxu0 %v1282_v10  ;;  %735 = vperm.xlu0 %1278, %v733_v14   ;;  %v1300_v20 = vld [vmem:[%s1761_s4 + $0xb0] ss:$12 sps:$4 sm:$0xff]   ;;  %v1291_v22 = vld [vmem:[%s1761_s4 + $0x4c] ss:$12 sps:$4 sm:$0xff]   ;;  %v1294_v25 = vld [vmem:[%s1761_s4 + $0x34] ss:$12 sps:$4 sm:$0xff]  }
 0x101   : > { %1189 = vmatpush3.bf16.msra.mxu1 %v1300_v20  ;;  %v1304_v23 = vld [vmem:[%s1761_s4 + $0x98] ss:$12 sps:$4 sm:$0xff]   ;;  %v1305_v26 = vld [vmem:[%s1761_s4 + $0x80] ss:$12 sps:$4 sm:$0xff]   ;;  %v1296_v27 = vld [vmem:[%s1761_s4 + $0x30] ss:$12 sps:$4 sm:$0xff]  }
 0x102   : > { %1190 = vmatprep.subr.bf16.mxu1 %v1386_v1  ;;  %v1297_v28 = vld [vmem:[%s1761_s4 + $0x1c] ss:$12 sps:$4 sm:$0xff]   ;;  %v1299_v30 = vld [vmem:[%s1761_s4 + $0x18] ss:$12 sps:$4 sm:$0xff]   ;;  %v1303_v33 = vld [vmem:[%s1761_s4] ss:$12 sps:$4 sm:$0xff]  }
 0x103   : > { %631 = vmatpush1.bf16.msra.mxu0 %v1284_v12  ;;  %v1306_v29 = vld [vmem:[%s1761_s4 + $0x68] ss:$12 sps:$4 sm:$0xff]   ;;  %v1301_v31 = vld [vmem:[%s1761_s4 + $0x4] ss:$12 sps:$4 sm:$0xff]   ;;  %v1309_v37 = vld [vmem:[%s1761_s4 + $0x20] ss:$12 sps:$4 sm:$0xff]  }
 0x104   : > { %632 = vmatprep.subr.bf16.mxu0 %v1285_v13  ;;  %v1307_v32 = vld [vmem:[%s1761_s4 + $0x50] ss:$12 sps:$4 sm:$0xff]   ;;  %v466_v34 = vld [vmem:[#allocation3] sm:$0xff]  ;;  %v1310_v38 = vld [vmem:[%s1761_s4 + $0x8] ss:$12 sps:$4 sm:$0xff]   ;;  %s1168_s17 = smul.u32 48, %s458_s16 }
 0x105   : > { %1191 = vmatpush3.bf16.msra.mxu1 %v1304_v23  ;;  %v1308_v35 = vld [vmem:[%s1761_s4 + $0x38] ss:$12 sps:$4 sm:$0xff]   ;;  %v467_v36 = vpack.c.bf16 %v466_v34, %v466_v34  ;;  %s456_s1 = sadd.s32 1, %s1378_s1  }
 0x106   : > { %1192 = vmatprep.subr.bf16.mxu1 %v1386_v1  ;;  %s462_s18 = scalar_lea.vmem [#allocation2], %s1168_s17  ;;  %p453_p0 = scmp.ge.s32.totalorder %s456_s1, 8  }
 0x107   : > { %633 = vmatpush1.bf16.msra.mxu0 %v1287_v15  ;;  %v463_v39 = vld [vmem:[%s462_s18] sm:$0xff]  ;;  %v464_v44 = vld [vmem:[%s462_s18 + $0x8] sm:$0xff]  ;;  %v465_v61 = vld [vmem:[%s462_s18 + $0x10] sm:$0xff]  ;;  %s1657_s22 = smov (%p453_p0), 0  }
 0x108   : > { %634 = vmatprep.subr.bf16.mxu0 %v1288_v16  ;;  %v1654_v60 = vld [vmem:[%s1763_s7] ss:$0 sm:$0xff] (%p453_p0) }
 0x109   : > { %1193 = vmatpush3.bf16.msra.mxu1 %v1305_v26 }
 0x10a   : > { %1194 = vmatprep.subr.bf16.mxu1 %v1386_v1 }
 0x10b   : > { %635 = vmatpush1.bf16.msra.mxu0 %v1290_v21 }
 0x10c   : > { %636 = vmatprep.subr.bf16.mxu0 %v1291_v22 }
 0x10d   : > { %1195 = vmatpush3.bf16.msra.mxu1 %v1306_v29 }
 0x10e   : > { %1196 = vmatprep.subr.bf16.mxu1 %v1386_v1 }
 0x10f   : > { %637 = vmatpush1.bf16.msra.mxu0 %v1293_v24 }
 0x110   : > { %638 = vmatprep.subr.bf16.mxu0 %v1294_v25 }
 0x111   : > { %1197 = vmatpush3.bf16.msra.mxu1 %v1307_v32 }
 0x112   : > { %1198 = vmatprep.subr.bf16.mxu1 %v1386_v1 }
 0x113   : > { %639 = vmatpush1.bf16.msra.mxu0 %v1296_v27 }
 0x114   : > { %640 = vmatprep.subr.bf16.mxu0 %v1297_v28 }
 0x115   : > { %1199 = vmatpush3.bf16.msra.mxu1 %v1308_v35 }
 0x116   : > { %1200 = vmatprep.subr.bf16.mxu1 %v1386_v1 }
 0x117   : > { %641 = vmatpush1.bf16.msra.mxu0 %v1299_v30 }
 0x118   : > { %642 = vmatprep.subr.bf16.mxu0 %v1301_v31 }
 0x119   : > { %1201 = vmatpush3.bf16.msra.mxu1 %v1309_v37 }
 0x11a   : > { %1202 = vmatprep.subr.bf16.mxu1 %v1386_v1 }
 0x11b   : > { %643 = vmatpush1.bf16.msra.mxu0 %v1303_v33 }
 0x11d   : > { %1203 = vmatpush3.bf16.msra.mxu1 %v1310_v38 }
 0x11e   : > { %661 = vmatmul.mubr.bf16.vlgmr.msra.gmra.mxu0 %v467_v36 }
 0x120   : > { %1205 = vmatmul.mubr.bf16.vlgmr.msra.gmra.mxu1 %v467_v36 }
 0x17b   : > { %v736_v3 = vpop.permute.xlu0 %735 }
 0x17c   : > { %vm737_vm3 = vcmp.eq.s32.totalorder %v736_v3, 1 }
 0x1de   : > { %v662_v40 = vpop.f32.mrf.mxu0 }
 0x1df   : > { %v709_v41 = vadd.f32 %v662_v40, %v463_v39 }
 0x1e0   : > { %v664_v42 = vpop.f32.mrf.mxu0  ;;  %v703_v48 = vpop.f32.mrf.mxu1 }
 0x1e1   : > { %v1137_v43 = vmul.f32 -1.442695, %v709_v41  ;;  %v716_v47 = vadd.f32 %v664_v42, %v464_v44  ;;  %v723_v57 = vadd.f32 %v1505_v18, %v703_v48 }
 0x1e2   : > { %v666_v45 = vpop.f32.mrf.mxu0  ;;  %v1206_v50 = vpop.f32.mrf.mxu1 }
 0x1e3   : > { %1311 = vpow2.f32 %v1137_v43  ;;  %v1138_v49 = vmul.f32 -1.442695, %v716_v47 }
 0x1e4   : > { %v667_v46 = vpop.f32.mrf.mxu0  ;;  %v706_v51 = vpop.f32.mrf.mxu1 }
 0x1e5   : > { %1313 = vpow2.f32 %v1138_v49 }
 0x1e6   : > { %v1207_v52 = vpop.f32.mrf.mxu1 }
 0x1f0   : > { %v1312_v53 = vpop.eup %1311 }
 0x1f1   : > { %v713_v54 = vadd.f32 1.0, %v1312_v53 }
 0x1f2   : > { %v1314_v55 = vpop.eup %1313 }
 0x1f3   : > { %1315 = vrcp.f32 %v713_v54  ;;  %v720_v56 = vadd.f32 1.0, %v1314_v55 }
 0x1f5   : > { %1317 = vrcp.f32 %v720_v56 }
 0x200   : > { %v1316_v58 = vpop.eup %1315 }
 0x201   : > { %v724_v62 = vmul.f32 %v1316_v58, %v723_v57 }
 0x202   : > { %v1318_v0 = vpop.eup %1317 }
 0x203   : > { %v725_v63 = vadd.f32 %v724_v62, %v465_v61  ;;  %v727_v4 = vsub.f32 1.0, %v1318_v0  ;;  %v729_v7 = vmul.f32 %v1318_v0, %v466_v34 }
 0x205   : > { %1319 = vtanh.f32 %v725_v63 }
 0x212   : > { %v1320_v5 = vpop.eup %1319 }
 0x213   : > { %v728_v6 = vmul.f32 %v1320_v5, %v727_v4 }
 0x214   :  { %455 = sbr.rel (!%p453_p0) target bundleno = 252 (0xfc), region = 70 }
 0x215   : > { %v730_v8 = vadd.f32 %v729_v7, %v728_v6 }
 0x217   : > { %v738_v9 = vsel %vm737_vm3, %v730_v8, %v466_v34  ;;  %v740_v59 = vsel %vm737_vm3, %v730_v8, 0.0 }
 0x218   : > { %739 = vst [vmem:[#allocation3] sm:$0xff] %v738_v9  ;;  %742 = vst [vmem:[%s741_s19] sm:$0xff] %v740_v59 }
 0x219   :  { %750 = vst [vmem:[#allocation3] sm:$0xff] %v1385_v19 }
 0x21a LB: > { %v1322_v1 = vld [vmem:[%s1762_s6 + $0xac] ss:$12 sps:$4 sm:$0xff]   ;;  %v1324_v18 = vld [vmem:[%s1762_s6 + $0xa8] ss:$12 sps:$4 sm:$0xff]   ;;  %v1389_v2 = vmov 0.0   ;;  %v1390_v19 = vmov 0   ;;  %s1382_s22 = sphi %s1657_s22, %s756_s22  }
 0x21b   : > { %1208 = vmatprep.subr.bf16.mxu1 %v1389_v2  ;;  %961 = vmatprep.mubr.bf16.mxu0 %v1390_v19  ;;  %v1325_v10 = vld [vmem:[%s1762_s6 + $0x94] ss:$12 sps:$4 sm:$0xff]   ;;  %vm1391_vm4 = vmmov 0   ;;  %s757_s26 = ssub.s32 7, %s1382_s22  ;;  %v1327_v11 = vld [vmem:[%s1762_s6 + $0x90] ss:$12 sps:$4 sm:$0xff]  }
 0x21c   : > { %929 = vmatprep.subr.bf16.mxu0 %v1322_v1  ;;  %1224 = vmatprep.mubr.msk.bf16.mxu1 %vm1391_vm4, %v1389_v2  ;;  %v1032_v12 = vstv %s757_s26  ;;  %v1328_v13 = vld [vmem:[%s1762_s6 + $0x7c] ss:$12 sps:$4 sm:$0xff]   ;;  %v1330_v15 = vld [vmem:[%s1762_s6 + $0x78] ss:$12 sps:$4 sm:$0xff]   ;;  %v1333_v21 = vld [vmem:[%s1762_s6 + $0x60] ss:$12 sps:$4 sm:$0xff]  }
 0x21d   : > { %930 = vmatpush1.bf16.msra.mxu0 %v1324_v18  ;;  %1321 = vset.pattern.permute.xlu0 %v1390_v19  ;;  %vm1033_vm5 = vcmp.gt.s32.totalorder %v1500_v17, %v1032_v12  ;;  %v1331_v16 = vld [vmem:[%s1762_s6 + $0x64] ss:$12 sps:$4 sm:$0xff]   ;;  %v1334_v22 = vld [vmem:[%s1762_s6 + $0x4c] ss:$12 sps:$4 sm:$0xff]   ;;  %v1336_v24 = vld [vmem:[%s1762_s6 + $0x48] ss:$12 sps:$4 sm:$0xff]  }
 0x21e   : > { %931 = vmatprep.subr.bf16.mxu0 %v1325_v10  ;;  %v1034_v14 = vsel %vm1033_vm5, 1, %v1390_v19  ;;  %v1343_v20 = vld [vmem:[%s1762_s6 + $0xb0] ss:$12 sps:$4 sm:$0xff]   ;;  %v1347_v23 = vld [vmem:[%s1762_s6 + $0x98] ss:$12 sps:$4 sm:$0xff]   ;;  %s1749_s18 = sshll.u32 %s757_s26, 3 }
 0x21f   : > { %1036 = vperm.xlu0 %1321, %v1034_v14   ;;  %1209 = vmatpush3.bf16.msra.mxu1 %v1343_v20  ;;  %v1337_v25 = vld [vmem:[%s1762_s6 + $0x34] ss:$12 sps:$4 sm:$0xff]   ;;  %v1339_v27 = vld [vmem:[%s1762_s6 + $0x30] ss:$12 sps:$4 sm:$0xff]   ;;  %v1342_v30 = vld [vmem:[%s1762_s6 + $0x18] ss:$12 sps:$4 sm:$0xff]   ;;  %s1042_s21 = scalar_lea.vmem %s1764_s8, %s1749_s18 }
 0x220   : > { %1210 = vmatprep.subr.bf16.mxu1 %v1389_v2  ;;  %v1348_v26 = vld [vmem:[%s1762_s6 + $0x80] ss:$12 sps:$4 sm:$0xff]   ;;  %v1340_v28 = vld [vmem:[%s1762_s6 + $0x1c] ss:$12 sps:$4 sm:$0xff]   ;;  %v1344_v31 = vld [vmem:[%s1762_s6 + $0x4] ss:$12 sps:$4 sm:$0xff]  }
 0x221   : > { %932 = vmatpush1.bf16.msra.mxu0 %v1327_v11  ;;  %v1349_v29 = vld [vmem:[%s1762_s6 + $0x68] ss:$12 sps:$4 sm:$0xff]   ;;  %v1350_v32 = vld [vmem:[%s1762_s6 + $0x50] ss:$12 sps:$4 sm:$0xff]   ;;  %v1346_v33 = vld [vmem:[%s1762_s6] ss:$12 sps:$4 sm:$0xff]  }
 0x222   : > { %933 = vmatprep.subr.bf16.mxu0 %v1328_v13  ;;  %v767_v34 = vld [vmem:[#allocation3] sm:$0xff]  ;;  %v1353_v38 = vld [vmem:[%s1762_s6 + $0x8] ss:$12 sps:$4 sm:$0xff]   ;;  %s759_s3 = sshra.s32 %s1749_s18, 3  ;;  %s756_s22 = sadd.s32 1, %s1382_s22  }
 0x223   : > { %1211 = vmatpush3.bf16.msra.mxu1 %v1347_v23  ;;  %v1351_v35 = vld [vmem:[%s1762_s6 + $0x38] ss:$12 sps:$4 sm:$0xff]   ;;  %v768_v36 = vpack.c.bf16 %v767_v34, %v767_v34  ;;  %v1352_v37 = vld [vmem:[%s1762_s6 + $0x20] ss:$12 sps:$4 sm:$0xff]   ;;  %s1169_s5 = smul.u32 48, %s759_s3  ;;  %p753_p1 = scmp.ge.s32.totalorder %s756_s22, 8  }
 0x224   : > { %1212 = vmatprep.subr.bf16.mxu1 %v1389_v2  ;;  %v1043_v9 = vld [vmem:[%s1042_s21] sm:$0xff] }
 0x225   : > { %934 = vmatpush1.bf16.msra.mxu0 %v1330_v15  ;;  %s763_s19 = scalar_lea.vmem [#allocation2], %s1169_s5 }
 0x226   : > { %935 = vmatprep.subr.bf16.mxu0 %v1331_v16  ;;  %v764_v39 = vld [vmem:[%s763_s19 + $0x18] sm:$0xff]  ;;  %v765_v44 = vld [vmem:[%s763_s19 + $0x20] sm:$0xff]  ;;  %v766_v61 = vld [vmem:[%s763_s19 + $0x28] sm:$0xff] }
 0x227   : > { %1213 = vmatpush3.bf16.msra.mxu1 %v1348_v26 }
 0x228   : > { %1214 = vmatprep.subr.bf16.mxu1 %v1389_v2 }
 0x229   : > { %936 = vmatpush1.bf16.msra.mxu0 %v1333_v21 }
 0x22a   : > { %937 = vmatprep.subr.bf16.mxu0 %v1334_v22 }
 0x22b   : > { %1215 = vmatpush3.bf16.msra.mxu1 %v1349_v29 }
 0x22c   : > { %1216 = vmatprep.subr.bf16.mxu1 %v1389_v2 }
 0x22d   : > { %938 = vmatpush1.bf16.msra.mxu0 %v1336_v24 }
 0x22e   : > { %939 = vmatprep.subr.bf16.mxu0 %v1337_v25 }
 0x22f   : > { %1217 = vmatpush3.bf16.msra.mxu1 %v1350_v32 }
 0x230   : > { %1218 = vmatprep.subr.bf16.mxu1 %v1389_v2 }
 0x231   : > { %940 = vmatpush1.bf16.msra.mxu0 %v1339_v27 }
 0x232   : > { %941 = vmatprep.subr.bf16.mxu0 %v1340_v28 }
 0x233   : > { %1219 = vmatpush3.bf16.msra.mxu1 %v1351_v35 }
 0x234   : > { %1220 = vmatprep.subr.bf16.mxu1 %v1389_v2 }
 0x235   : > { %942 = vmatpush1.bf16.msra.mxu0 %v1342_v30 }
 0x236   : > { %943 = vmatprep.subr.bf16.mxu0 %v1344_v31 }
 0x237   : > { %1221 = vmatpush3.bf16.msra.mxu1 %v1352_v37 }
 0x238   : > { %1222 = vmatprep.subr.bf16.mxu1 %v1389_v2 }
 0x239   : > { %944 = vmatpush1.bf16.msra.mxu0 %v1346_v33 }
 0x23b   : > { %1223 = vmatpush3.bf16.msra.mxu1 %v1353_v38 }
 0x23c   : > { %962 = vmatmul.mubr.bf16.vlgmr.msra.gmra.mxu0 %v768_v36 }
 0x23e   : > { %1225 = vmatmul.mubr.bf16.vlgmr.msra.gmra.mxu1 %v768_v36 }
 0x29a   : > { %v1037_v3 = vpop.permute.xlu0 %1036 }
 0x29b   : > { %vm1038_vm6 = vcmp.eq.s32.totalorder %v1037_v3, 1 }
 0x2fc   : > { %v963_v40 = vpop.f32.mrf.mxu0 }
 0x2fd   : > { %v1010_v41 = vadd.f32 %v963_v40, %v764_v39 }
 0x2fe   : > { %v965_v42 = vpop.f32.mrf.mxu0  ;;  %v1004_v48 = vpop.f32.mrf.mxu1 }
 0x2ff   : > { %v1166_v43 = vmul.f32 -1.442695, %v1010_v41  ;;  %v1017_v47 = vadd.f32 %v965_v42, %v765_v44  ;;  %v1024_v57 = vadd.f32 %v1654_v60, %v1004_v48 }
 0x300   : > { %v967_v45 = vpop.f32.mrf.mxu0  ;;  %v1226_v50 = vpop.f32.mrf.mxu1 }
 0x301   : > { %1354 = vpow2.f32 %v1166_v43  ;;  %v1167_v49 = vmul.f32 -1.442695, %v1017_v47 }
 0x302   : > { %v968_v46 = vpop.f32.mrf.mxu0  ;;  %v1007_v51 = vpop.f32.mrf.mxu1 }
 0x303   : > { %1356 = vpow2.f32 %v1167_v49 }
 0x304   : > { %v1227_v52 = vpop.f32.mrf.mxu1 }
 0x30e   : > { %v1355_v53 = vpop.eup %1354 }
 0x30f   : > { %v1014_v54 = vadd.f32 1.0, %v1355_v53 }
 0x310   : > { %v1357_v55 = vpop.eup %1356 }
 0x311   : > { %1358 = vrcp.f32 %v1014_v54  ;;  %v1021_v56 = vadd.f32 1.0, %v1357_v55 }
 0x313   : > { %1360 = vrcp.f32 %v1021_v56 }
 0x31e   : > { %v1359_v58 = vpop.eup %1358 }
 0x31f   : > { %v1025_v62 = vmul.f32 %v1359_v58, %v1024_v57 }
 0x320   : > { %v1361_v0 = vpop.eup %1360 }
 0x321   : > { %v1026_v63 = vadd.f32 %v1025_v62, %v766_v61  ;;  %v1028_v4 = vsub.f32 1.0, %v1361_v0  ;;  %v1030_v7 = vmul.f32 %v1361_v0, %v767_v34 }
 0x323   : > { %1362 = vtanh.f32 %v1026_v63 }
 0x330   : > { %v1363_v5 = vpop.eup %1362 }
 0x331   : > { %v1029_v6 = vmul.f32 %v1363_v5, %v1028_v4 }
 0x333   : > { %v1031_v8 = vadd.f32 %v1030_v7, %v1029_v6 }
 0x335   : > { %v1039_v59 = vsel %vm1038_vm6, %v1031_v8, %v767_v34  ;;  %v1041_v1 = vsel %vm1038_vm6, %v1031_v8, 0.0 }
 0x336   : > { %1040 = vst [vmem:[#allocation3] sm:$0xff] %v1039_v59  ;;  %v1044_v18 = vadd.f32 %v1043_v9, %v1041_v1 }
 0x338   : > { %v1045_v2 = vmul.f32 0.5, %v1044_v18 }
 0x33a   : > { %v1046_v19 = vmul.f32 %v1045_v2, %v1045_v2 }
 0x33c   : > { %1047 = vadd.xlane.f32.xlu0 %v1046_v19 }
 0x3c5   : > { %v1048_v10 = vpop.xlane.xlu0 %1047 }
 0x3c6   : > { %1364 = vrsqrt.f32 %v1048_v10  ;;  %vm1051_vm7 = vcmp.eq.f32.partialorder %v1048_v10, inf  ;;  %v1054_v13 = vand.u32 2147483648, %v1048_v10  ;;  %vm1053_vm8 = vcmp.eq.f32.partialorder %v1048_v10, 0.0 }
 0x3d3   : > { %v1365_v11 = vpop.eup %1364 }
 0x3d4   : > { %v1050_v12 = vmul.f32 %v1365_v11, %v1048_v10 }
 0x3d6   : > { %v1052_v14 = vsel %vm1051_vm7, %v1048_v10, %v1050_v12 }
 0x3d7   : > { %v1055_v15 = vsel %vm1053_vm8, %v1054_v13, %v1052_v14 }
 0x3d8   : > { %v1056_v16 = vadd.f32 1e-08, %v1055_v15 }
 0x3da   : > { %1366 = vrcp.f32 %v1056_v16 }
 0x3e6   :  { %755 = sbr.rel (!%p753_p1) target bundleno = 538 (0x21a), region = 81 }
 0x3e7   : > { %v1367_v20 = vpop.eup %1366 }
 0x3e8   : > { %v1058_v21 = vmul.f32 %v1367_v20, %v1045_v2 }
 0x3ea   : > { %1059 = vst [vmem:[%s1042_s21] sm:$0xff] %v1058_v21 }

</bundles_post_ra>
